<compile_context>
chip_gen: v7x
topology: tpu7x:2x2x1
jax: 0.10.0
libtpu: 0.0.40
codegen_flags: <defaults>
</compile_context>

<pallas_src>
import functools

import jax
import jax.numpy as jnp
from jax.experimental import pallas as pl
from jax.experimental.pallas import tpu as pltpu


def _round_up(x, m):
    return ((x + m - 1) // m) * m


def _choose_tile_b(B, F, H, C, itemsize, vmem_budget=48 << 20):
    """Largest batch tile (multiple of 8) whose double-buffered x tile fits VMEM."""
    # Weights/biases have constant index maps (resident) but the pipeline still
    # allocates two buffers for them, so account for that.
    weight_bytes = 2 * (F * H + H * C) * itemsize
    x_budget = max(1 << 20, vmem_budget - weight_bytes)
    max_tile = (x_budget // (2 * F * itemsize)) // 8 * 8
    # 512 rows already hits ~85% of HBM roofline; keeping >=2 grid steps for
    # large B keeps the DMA pipeline (and optionally both v7x TCs) busy.
    max_tile = int(max(8, min(512, max_tile)))
    if B <= max_tile:
        return _round_up(B, 8)
    n_tiles = -(-B // max_tile)
    return max(8, _round_up(-(-B // n_tiles), 8))


def mlp_kernel(x_ref, w1_ref, b1_ref, w2_ref, b2_ref, o_ref):
    # fc1: [TB, F] @ [F, H] with f32 accumulation on the MXU.
    h = jnp.dot(x_ref[...], w1_ref[...], preferred_element_type=jnp.float32)
    # Bias + ReLU on the VPU in f32 (v5e has no bf16 VPU path; f32 works on all).
    h = jnp.maximum(h + b1_ref[...], 0.0)
    # fc2: [TB, H] @ [H, C]; cast h to the weight dtype so the bf16 path also
    # runs the second matmul at bf16 MXU rate.
    y = jnp.dot(h.astype(w2_ref.dtype), w2_ref[...],
                preferred_element_type=jnp.float32)
    # C is tiny (=4): one masked vst per 8 rows, negligible for this
    # bandwidth-bound kernel and far cheaper than a padded (TB, 128) writeback.
    o_ref[...] = (y + b2_ref[...]).astype(o_ref.dtype)


@functools.partial(jax.jit,
                   static_argnames=("tile_b", "use_bf16", "use_core_parallel"))
def text_classifier_forward(x, w1, b1, w2, b2, *, tile_b=None, use_bf16=False,
                            use_core_parallel=False):
    B, F = x.shape
    Fw, H = w1.shape
    Hw, C = w2.shape
    assert F == Fw and H == Hw, "weight shapes inconsistent with input"

    compute_dtype = jnp.bfloat16 if use_bf16 else jnp.float32
    in_itemsize = jnp.dtype(compute_dtype).itemsize

    if tile_b is None:
        tile_b = _choose_tile_b(B, F, H, C, in_itemsize)

    # No F/H/C padding: only casts (no-ops in the f32 path).
    x_c = x.astype(compute_dtype)
    w1_c = w1.astype(compute_dtype)
    w2_c = w2.astype(compute_dtype)
    b1_c = b1.reshape(1, H).astype(jnp.float32)
    b2_c = b2.reshape(1, C).astype(jnp.float32)

    # Only the batch dim is ever padded, and only when B isn't a multiple of
    # the tile; padded rows are sliced away again below.
    Bp = _round_up(B, tile_b)
    if Bp != B:
        x_c = jnp.pad(x_c, ((0, Bp - B), (0, 0)))

    grid = (Bp // tile_b,)

    vmem_est = (2 * tile_b * F * in_itemsize      # x (double-buffered)
                + 2 * F * H * in_itemsize         # w1 (resident, 2 buffers)
                + 2 * H * C * in_itemsize         # w2
                + 2 * (H + C) * 4                 # biases
                + 2 * tile_b * C * 4              # out (double-buffered)
                + 4 * tile_b * H * 4)             # fc1 activation headroom
    vmem_limit = int(min(64 << 20, max(32 << 20, 2 * vmem_est)))

    cost = pl.CostEstimate(
        flops=2 * Bp * (F * H + H * C),
        transcendentals=0,
        bytes_accessed=(Bp * F * in_itemsize + F * H * in_itemsize
                        + H * C * in_itemsize + (H + C) * 4 + Bp * C * 4))

    batch_sem = pltpu.CORE_PARALLEL if use_core_parallel else "parallel"

    out = pl.pallas_call(
        mlp_kernel,
        out_shape=jax.ShapeDtypeStruct((Bp, C), jnp.float32),
        grid_spec=pltpu.PrefetchScalarGridSpec(
            num_scalar_prefetch=0,
            grid=grid,
            in_specs=[
                # x streams tile-by-tile; last dim is the full (unpadded) F.
                pl.BlockSpec((tile_b, F), lambda i: (i, 0)),
                # Weights/biases: constant index maps -> fetched once, resident.
                # TODO(synk): mark these pipeline_mode=pl.Buffered(1) to halve
                # their VMEM footprint once single-buffered inputs are supported.
                pl.BlockSpec((F, H), lambda i: (0, 0)),
                pl.BlockSpec((1, H), lambda i: (0, 0)),
                pl.BlockSpec((H, C), lambda i: (0, 0)),
                pl.BlockSpec((1, C), lambda i: (0, 0)),
            ],
            out_specs=pl.BlockSpec((tile_b, C), lambda i: (i, 0)),
        ),
        compiler_params=pltpu.CompilerParams(
            dimension_semantics=(batch_sem,),
            vmem_limit_bytes=vmem_limit),
        cost_estimate=cost,
    )(x_c, w1_c, b1_c, w2_c, b2_c)

    return out if Bp == B else out[:B]


def init_params(key, input_size, num_classes, hidden=128):
    # Deterministic synthetic init (uniform, roughly PyTorch Linear scale).
    k1, k2, k3, k4 = jax.random.split(key, 4)
    bound1 = 1.0 / (input_size ** 0.5)
    bound2 = 1.0 / (hidden ** 0.5)
    w1 = jax.random.uniform(k1, (input_size, hidden), jnp.float32, -bound1, bound1)
    b1 = jax.random.uniform(k2, (1, hidden), jnp.float32, -bound1, bound1)
    w2 = jax.random.uniform(k3, (hidden, num_classes), jnp.float32, -bound2, bound2)
    b2 = jax.random.uniform(k4, (1, num_classes), jnp.float32, -bound2, bound2)
    return w1, b1, w2, b2


def reference_forward(x, w1, b1, w2, b2):
    h = jnp.maximum(x @ w1 + b1, 0.0)
    return h @ w2 + b2


if __name__ == "__main__":
    # Small shapes implied by the module: x is [batch, input_size].
    # input_size chosen non-multiple-of-128 to exercise the unpadded-F path.
    batch = 8
    input_size = 200
    num_classes = 4
    hidden = 128

    key = jax.random.PRNGKey(0)
    kx, kp = jax.random.split(key)
    x = jax.random.normal(kx, (batch, input_size), jnp.float32)
    w1, b1, w2, b2 = init_params(kp, input_size, num_classes, hidden)

    ref = reference_forward(x, w1, b1, w2, b2)

    # f32 path (default; matches the reference closely).
    out = text_classifier_forward(x, w1, b1, w2, b2)
    out = jax.block_until_ready(out)
    assert out.shape == (batch, num_classes)
    assert jnp.allclose(out, ref, atol=1e-4, rtol=1e-4)

    # Ragged batch (not a multiple of 8) exercises the batch-padding path.
    out5 = jax.block_until_ready(text_classifier_forward(x[:5], w1, b1, w2, b2))
    assert out5.shape == (5, num_classes)
    assert jnp.allclose(out5, ref[:5], atol=1e-4, rtol=1e-4)

    # bf16 input path (now allowed on v5e as well: its MXU takes bf16, and
    # bias+ReLU stay in f32 vregs); f32 MXU accumulation keeps drift small.
    out_bf16 = jax.block_until_ready(
        text_classifier_forward(x, w1, b1, w2, b2, use_bf16=True))
    assert out_bf16.shape == (batch, num_classes)
    assert jnp.allclose(out_bf16, ref, atol=5e-2, rtol=5e-2)

    print("KERNEL_OK")
</pallas_src>

<mosaic_0001>
module attributes {stable_mosaic.version = 11 : i64} {
  func.func @mlp_kernel(%arg0: i32, %arg1: memref<8x200xf32, #tpu.memory_space<vmem>>, %arg2: memref<200x128xf32, #tpu.memory_space<vmem>>, %arg3: memref<1x128xf32, #tpu.memory_space<vmem>>, %arg4: memref<128x4xf32, #tpu.memory_space<vmem>>, %arg5: memref<1x4xf32, #tpu.memory_space<vmem>>, %arg6: memref<8x4xf32, #tpu.memory_space<vmem>>) attributes {dimension_semantics = [#tpu.dimension_semantics<parallel>], iteration_bounds = array<i64: 1>, scalar_prefetch = 0 : i64, scratch_operands = 0 : i64, tpu.core_type = #tpu.core_type<tc>, window_params = [{transform_indices = @transform_0, window_bounds = array<i64: 8, 200>}, {pipeline_mode = #tpu.pipeline_mode<synchronous>, transform_indices = @transform_1, window_bounds = array<i64: 200, 128>}, {pipeline_mode = #tpu.pipeline_mode<synchronous>, transform_indices = @transform_2, window_bounds = array<i64: 1, 128>}, {pipeline_mode = #tpu.pipeline_mode<synchronous>, transform_indices = @transform_3, window_bounds = array<i64: 128, 4>}, {pipeline_mode = #tpu.pipeline_mode<synchronous>, transform_indices = @transform_4, window_bounds = array<i64: 1, 4>}, {transform_indices = @transform_5, window_bounds = array<i64: 8, 4>}]} {
    %c0 = arith.constant 0 : index
    %c0_0 = arith.constant 0 : index
    %0 = vector.load %arg1[%c0, %c0_0] : memref<8x200xf32, #tpu.memory_space<vmem>>, vector<8x200xf32>
    %c0_1 = arith.constant 0 : index
    %c0_2 = arith.constant 0 : index
    %1 = vector.load %arg2[%c0_1, %c0_2] : memref<200x128xf32, #tpu.memory_space<vmem>>, vector<200x128xf32>
    %cst = arith.constant dense<0.000000e+00> : vector<8x128xf32>
    %2 = tpu.matmul %0, %1, %cst {dimension_numbers = #tpu.dot_dimension_numbers<[1], [0], [0], [1], [0, 0, 1, 1], [], []>} : vector<8x200xf32>, vector<200x128xf32>, vector<8x128xf32> -> vector<8x128xf32>
    %c0_3 = arith.constant 0 : index
    %c0_4 = arith.constant 0 : index
    %3 = vector.load %arg3[%c0_3, %c0_4] : memref<1x128xf32, #tpu.memory_space<vmem>>, vector<1x128xf32>
    %4 = vector.broadcast %3 : vector<1x128xf32> to vector<8x128xf32>
    %5 = arith.addf %2, %4 : vector<8x128xf32>
    %cst_5 = arith.constant 0.000000e+00 : f32
    %6 = vector.broadcast %cst_5 : f32 to vector<8x128xf32>
    %7 = arith.maximumf %5, %6 : vector<8x128xf32>
    %c0_6 = arith.constant 0 : index
    %c0_7 = arith.constant 0 : index
    %8 = vector.load %arg4[%c0_6, %c0_7] : memref<128x4xf32, #tpu.memory_space<vmem>>, vector<128x4xf32>
    %cst_8 = arith.constant dense<0.000000e+00> : vector<8x4xf32>
    %9 = tpu.matmul %7, %8, %cst_8 {dimension_numbers = #tpu.dot_dimension_numbers<[1], [0], [0], [1], [0, 0, 1, 1], [], []>} : vector<8x128xf32>, vector<128x4xf32>, vector<8x4xf32> -> vector<8x4xf32>
    %c0_9 = arith.constant 0 : index
    %c0_10 = arith.constant 0 : index
    %10 = vector.load %arg5[%c0_9, %c0_10] : memref<1x4xf32, #tpu.memory_space<vmem>>, vector<1x4xf32>
    %11 = vector.broadcast %10 : vector<1x4xf32> to vector<8x4xf32>
    %12 = arith.addf %9, %11 : vector<8x4xf32>
    %c0_11 = arith.constant 0 : index
    %c0_12 = arith.constant 0 : index
    %13 = vector.load %arg6[%c0_11, %c0_12] : memref<8x4xf32, #tpu.memory_space<vmem>>, vector<8x4xf32>
    tpu.vector_store %arg6[%c0_11, %c0_12], %12 {strides = array<i32>} : memref<8x4xf32, #tpu.memory_space<vmem>>, vector<8x4xf32>,
    return
  }
  func.func @transform_0(%arg0: i32) -> (i32, i32) {
    %c0_i32 = arith.constant 0 : i32
    %c0_i32_0 = arith.constant 0 : i32
    return %arg0, %c0_i32 : i32, i32
  }
  func.func @transform_1(%arg0: i32) -> (i32, i32) {
    %c0_i32 = arith.constant 0 : i32
    %c0_i32_0 = arith.constant 0 : i32
    %c0_i32_1 = arith.constant 0 : i32
    return %c0_i32, %c0_i32_0 : i32, i32
  }
  func.func @transform_2(%arg0: i32) -> (i32, i32) {
    %c0_i32 = arith.constant 0 : i32
    %c0_i32_0 = arith.constant 0 : i32
    %c0_i32_1 = arith.constant 0 : i32
    return %c0_i32, %c0_i32_0 : i32, i32
  }
  func.func @transform_3(%arg0: i32) -> (i32, i32) {
    %c0_i32 = arith.constant 0 : i32
    %c0_i32_0 = arith.constant 0 : i32
    %c0_i32_1 = arith.constant 0 : i32
    return %c0_i32, %c0_i32_0 : i32, i32
  }
  func.func @transform_4(%arg0: i32) -> (i32, i32) {
    %c0_i32 = arith.constant 0 : i32
    %c0_i32_0 = arith.constant 0 : i32
    %c0_i32_1 = arith.constant 0 : i32
    return %c0_i32, %c0_i32_0 : i32, i32
  }
  func.func @transform_5(%arg0: i32) -> (i32, i32) {
    %c0_i32 = arith.constant 0 : i32
    %c0_i32_0 = arith.constant 0 : i32
    return %arg0, %c0_i32 : i32, i32
  }
}

</mosaic_0001>

<bundles_post_ra>
// kernel: text_classifier_forward.1
= control target key start
LH: loop header
LB: loop body
LE: loop exit
PB: predicated region body
PF: predicated region fallthrough
CT: control target
= control target key end

     0   :  { %10 = vsyncpa [#allocation3], 0  ;;  %s388_s18 = smov [#allocation2]   ;;  %s519_s0 = inlined_call_operand.vmem [shape: f32[8,200], index: 0, kind: input, shape index: {}]   ;;  %s520_s1 = inlined_call_operand.hbm [shape: f32[200,128], index: 1, kind: input, shape index: {}]   ;;  %s521_s2 = inlined_call_operand.vmem [shape: f32[1,128], index: 2, kind: input, shape index: {}]   ;;  %s522_s3 = inlined_call_operand.vmem [shape: f32[128,4], index: 3, kind: input, shape index: {}]   ;;  %s523_s4 = inlined_call_operand.vmem [shape: f32[1,4], index: 4, kind: input, shape index: {}]   ;;  %s524_s5 = inlined_call_operand.vmem [shape: f32[8,4], index: 5, kind: output, shape index: {}]  }
   0x1   :  { %s18_s19 = sshll.u32 %s388_s18, 4  ;;  %s364_s22 = scalar_lea.hbm %s520_s1, 3200  ;;  %s19_s19 = int_to_ptr.vmem [resolvable:$true] %s18_s19 }
   0x2   :  { %p365_p0 = scmp.ne.s32.totalorder %s520_s1, %s364_s22  ;;  %p368_p1 = scmp.lt.u32.totalorder %s364_s22, %s520_s1 }
   0x4   :  { %p370_p2 = pnand %p368_p1, %p365_p0 }
   0x6   :  { %373 = shalt.err (!%p370_p2)
}
   0x7   :  { %s374_s27 = scalar_lea.vmem %s19_s19, 3200  ;;  %p379_p4 = scmp.lt.s32.totalorder %s19_s19, %s19_s19 }
   0x8   :  { %p375_p3 = scmp.ne.s32.totalorder %s19_s19, %s374_s27  ;;  %p380_p5 = scmp.lt.s32.totalorder %s374_s27, %s374_s27 }
   0xa   :  { %p381_p6 = por %p380_p5, %p379_p4 }
   0xc   :  { %p382_p7 = pnand %p381_p6, %p375_p3 }
   0xe   :  { %385 = shalt.err (!%p382_p7)
}
   0xf   :  { %s389_s28 = smov 128   ;;  %s390_s29 = smov 8  }
  0x10   :  { %24 = dma.hbm_to_vmem [thread:$0]  %s520_s1, 3200, %s19_s19, [#allocation3], %s389_s28, %s389_s28, %s390_s29  }
  0x11   :  { %386 = dma.done.wait [#allocation3], 3200  }
  0x12   :  { %387 = vsyncadd [#allocation3], 4294964096  ;;  %v391_v0 = vmov 0.0|0.0   ;;  %v36_v1 = vld [vmem:[#allocation2] sm:$0xff]  ;;  %v37_v2 = vld [vmem:[#allocation2 + $0x8] sm:$0xff]  ;;  %vm68_vm0 = vcmask 588800  }
  0x13   :  { %298 = vmatprep.subr.bf16.mxu0 %v391_v0  ;;  %334 = vmatprep.subr.bf16.mxu1 %v391_v0  ;;  %v38_v3 = vld [vmem:[#allocation2 + $0x10] sm:$0xff]  ;;  %v299_v4 = vpack.c.bf16 %v37_v2, %v36_v1  ;;  %v39_v5 = vld [vmem:[#allocation2 + $0x18] sm:$0xff]  ;;  %v40_v7 = vld [vmem:[#allocation2 + $0x20] sm:$0xff]  ;;  %v392_v59 = vmov 0.0   ;;  %vm393_vm1 = vmmov 0   ;;  %vm236_vm2 = vcmask 31744  }
  0x14   :  { %v302_v6 = vpack.c.bf16 %v39_v5, %v38_v3  ;;  %v41_v8 = vld [vmem:[#allocation2 + $0x28] sm:$0xff]  ;;  %v42_v10 = vld [vmem:[#allocation2 + $0x30] sm:$0xff]  ;;  %v43_v11 = vld [vmem:[#allocation2 + $0x38] sm:$0xff]  ;;  %295 = vmatprep.mubr.msk.f32.mxu1 %vm393_vm1, %v392_v59 }
  0x15   :  { %300 = vmatpush1.bf16.msra.mxu0 %v299_v4  ;;  %v305_v9 = vpack.c.bf16 %v41_v8, %v40_v7  ;;  %v35_v12 = vld [vmem:[%s519_s0 + $0x8] sm:$0xff]  ;;  %v143_v13 = vld [vmem:[%s522_s3] sm:$0xff]  ;;  %v145_v15 = vld [vmem:[%s522_s3 + $0x10] sm:$0xff]  ;;  %v308_v18 = vpack.c.bf16 %v43_v11, %v42_v10 }
  0x16   :  { %301 = vmatprep.subr.bf16.mxu0 %v391_v0  ;;  %244 = vmatprep.mubr.msk.f32.mxu0 %vm68_vm0, %v35_v12  ;;  %v144_v14 = vld [vmem:[%s522_s3 + $0x8] sm:$0xff]  ;;  %v146_v17 = vld [vmem:[%s522_s3 + $0x18] sm:$0xff]  ;;  %v44_v19 = vld [vmem:[#allocation2 + $0x40] sm:$0xff] }
  0x17   :  { %v335_v16 = vpack.c.bf16 %v144_v14, %v143_v13  ;;  %v45_v20 = vld [vmem:[#allocation2 + $0x48] sm:$0xff]  ;;  %v338_v21 = vpack.c.bf16 %v146_v17, %v145_v15  ;;  %v147_v22 = vld [vmem:[%s522_s3 + $0x20] sm:$0xff]  ;;  %v46_v25 = vld [vmem:[#allocation2 + $0x50] sm:$0xff] }
  0x18   :  { %v148_v23 = vld [vmem:[%s522_s3 + $0x28] sm:$0xff]  ;;  %v311_v24 = vpack.c.bf16 %v45_v20, %v44_v19  ;;  %v47_v26 = vld [vmem:[#allocation2 + $0x58] sm:$0xff]  ;;  %v149_v28 = vld [vmem:[%s522_s3 + $0x30] sm:$0xff] }
  0x19   :  { %303 = vmatpush1.bf16.msra.mxu0 %v302_v6  ;;  %336 = vmatpush3.bf16.msra.mxu1 %v335_v16  ;;  %v341_v27 = vpack.c.bf16 %v148_v23, %v147_v22  ;;  %v150_v29 = vld [vmem:[%s522_s3 + $0x38] sm:$0xff]  ;;  %v314_v30 = vpack.c.bf16 %v47_v26, %v46_v25  ;;  %v48_v31 = vld [vmem:[#allocation2 + $0x60] sm:$0xff]  ;;  %v49_v32 = vld [vmem:[#allocation2 + $0x68] sm:$0xff] }
  0x1a   :  { %304 = vmatprep.subr.bf16.mxu0 %v391_v0  ;;  %337 = vmatprep.subr.bf16.mxu1 %v391_v0  ;;  %v344_v33 = vpack.c.bf16 %v150_v29, %v149_v28  ;;  %v151_v34 = vld [vmem:[%s522_s3 + $0x40] sm:$0xff]  ;;  %v152_v35 = vld [vmem:[%s522_s3 + $0x48] sm:$0xff]  ;;  %v317_v36 = vpack.c.bf16 %v49_v32, %v48_v31  ;;  %v50_v37 = vld [vmem:[#allocation2 + $0x70] sm:$0xff] }
  0x1b   :  { %v51_v38 = vld [vmem:[#allocation2 + $0x78] sm:$0xff]  ;;  %v347_v39 = vpack.c.bf16 %v152_v35, %v151_v34  ;;  %v153_v40 = vld [vmem:[%s522_s3 + $0x50] sm:$0xff]  ;;  %v52_v43 = vld [vmem:[#allocation2 + $0x80] sm:$0xff] }
  0x1c   :  { %v154_v41 = vld [vmem:[%s522_s3 + $0x58] sm:$0xff]  ;;  %v320_v42 = vpack.c.bf16 %v51_v38, %v50_v37  ;;  %v53_v44 = vld [vmem:[#allocation2 + $0x88] sm:$0xff]  ;;  %v155_v46 = vld [vmem:[%s522_s3 + $0x60] sm:$0xff] }
  0x1d   :  { %306 = vmatpush1.bf16.msra.mxu0 %v305_v9  ;;  %339 = vmatpush3.bf16.msra.mxu1 %v338_v21  ;;  %v350_v45 = vpack.c.bf16 %v154_v41, %v153_v40  ;;  %v156_v47 = vld [vmem:[%s522_s3 + $0x68] sm:$0xff]  ;;  %v323_v48 = vpack.c.bf16 %v53_v44, %v52_v43  ;;  %v54_v49 = vld [vmem:[#allocation2 + $0x90] sm:$0xff]  ;;  %v55_v50 = vld [vmem:[#allocation2 + $0x98] sm:$0xff] }
  0x1e   :  { %307 = vmatprep.subr.bf16.mxu0 %v391_v0  ;;  %340 = vmatprep.subr.bf16.mxu1 %v391_v0  ;;  %v353_v51 = vpack.c.bf16 %v156_v47, %v155_v46  ;;  %v326_v52 = vpack.c.bf16 %v55_v50, %v54_v49  ;;  %v56_v53 = vld [vmem:[#allocation2 + $0xa0] sm:$0xff]  ;;  %v57_v54 = vld [vmem:[#allocation2 + $0xa8] sm:$0xff]  ;;  %v58_v56 = vld [vmem:[#allocation2 + $0xb0] sm:$0xff] }
  0x1f   :  { %v329_v55 = vpack.c.bf16 %v57_v54, %v56_v53  ;;  %v59_v57 = vld [vmem:[#allocation2 + $0xb8] sm:$0xff]  ;;  %v60_v60 = vld [vmem:[#allocation2 + $0xc0] sm:$0xff]  ;;  %v157_v62 = vld [vmem:[%s522_s3 + $0x70] sm:$0xff] }
  0x20   :  { %v332_v58 = vpack.c.bf16 %v59_v57, %v58_v56  ;;  %v34_v61 = vld [vmem:[%s519_s0] sm:$0xff]  ;;  %v158_v63 = vld [vmem:[%s522_s3 + $0x78] sm:$0xff] }
  0x21   :  { %309 = vmatpush1.bf16.msra.mxu0 %v308_v18  ;;  %342 = vmatpush3.bf16.msra.mxu1 %v341_v27  ;;  %v356_v1 = vpack.c.bf16 %v158_v63, %v157_v62  ;;  %v245_v6 = vld [vmem:[%s523_s4] ss:$0 sm:$0xff] }
  0x22   :  { %310 = vmatprep.subr.bf16.mxu0 %v391_v0  ;;  %343 = vmatprep.subr.bf16.mxu1 %v391_v0 }
  0x25   :  { %312 = vmatpush1.bf16.msra.mxu0 %v311_v24  ;;  %345 = vmatpush3.bf16.msra.mxu1 %v344_v33 }
  0x26   :  { %313 = vmatprep.subr.bf16.mxu0 %v391_v0  ;;  %346 = vmatprep.subr.bf16.mxu1 %v391_v0 }
  0x29   :  { %315 = vmatpush1.bf16.msra.mxu0 %v314_v30  ;;  %348 = vmatpush3.bf16.msra.mxu1 %v347_v39 }
  0x2a   :  { %316 = vmatprep.subr.bf16.mxu0 %v391_v0  ;;  %349 = vmatprep.subr.bf16.mxu1 %v391_v0 }
  0x2d   :  { %318 = vmatpush1.bf16.msra.mxu0 %v317_v36  ;;  %351 = vmatpush3.bf16.msra.mxu1 %v350_v45 }
  0x2e   :  { %319 = vmatprep.subr.bf16.mxu0 %v391_v0  ;;  %352 = vmatprep.subr.bf16.mxu1 %v391_v0 }
  0x31   :  { %321 = vmatpush1.bf16.msra.mxu0 %v320_v42  ;;  %354 = vmatpush3.bf16.msra.mxu1 %v353_v51 }
  0x32   :  { %322 = vmatprep.subr.bf16.mxu0 %v391_v0  ;;  %355 = vmatprep.subr.bf16.mxu1 %v391_v0 }
  0x35   :  { %324 = vmatpush1.bf16.msra.mxu0 %v323_v48  ;;  %357 = vmatpush3.bf16.msra.mxu1 %v356_v1 }
  0x36   :  { %325 = vmatprep.subr.bf16.mxu0 %v391_v0 }
  0x39   :  { %327 = vmatpush1.bf16.msra.mxu0 %v326_v52 }
  0x3a   :  { %328 = vmatprep.subr.bf16.mxu0 %v391_v0 }
  0x3d   :  { %330 = vmatpush1.bf16.msra.mxu0 %v329_v55 }
  0x3e   :  { %331 = vmatprep.subr.bf16.mxu0 %v391_v0  ;;  %v243_v0 = vld [vmem:[%s521_s2] ss:$0 sm:$0xff] }
  0x41   :  { %333 = vmatpush1.bf16.msra.mxu0 %v332_v58 }
  0x42   :  { %120 = vmatprep.subr.mxu0 %v392_v59 }
  0x45   :  { %121 = vmatpush1.msra.mxu0 %v60_v60 }
  0x46   :  { %137 = vmatmul.mubr.f32.vlgmr.msra.gmra.mrb[0].mxu0 %v34_v61 }
 0x119   :  { %v138_v2 = vpop.f32.mrb[0].mxu0 }
 0x11a   :  { %v139_v3 = vadd.f32 %v243_v0, %v138_v2  ;;  %v140_v4 = vpop.f32.mrb[1].mxu0 }
 0x11c   :  { %v142_v5 = vmax.f32 %v139_v3, 0.0 }
 0x11e   :  { %296 = vmatmul.mubr.f32.vlgmr.msra.gmra.mrb[0].mxu1 %v142_v5 }
 0x1f1   :  { %v232_v7 = vpop.f32.mrb[0].mxu1 }
 0x1f2   :  { %v233_v8 = vadd.f32 %v245_v6, %v232_v7  ;;  %v297_v9 = vpop.f32.mrb[1].mxu1 }
 0x1f4   :  { %237 = vst.msk [vmem:[%s524_s5] sm:$0xff] %vm236_vm2, %v233_v8 }
 0x1f5   :  { %242 = vsyncpa [#allocation3], 1 }

</bundles_post_ra>
